<compile_context>
chip_gen: v7x
topology: tpu7x:2x2x1
jax: 0.10.0
libtpu: 0.0.40
codegen_flags: <defaults>
</compile_context>

<pallas_src>
import jax
import jax.numpy as jnp
from jax.experimental import pallas as pl
from jax.experimental.pallas import tpu as pltpu


def _logreg_kernel(x_ref, w_ref, b_ref, o_ref):
    # x_ref: (TILE_N, F) VMEM; w_ref: (1, F) VMEM (resident); b_ref: (1,) SMEM;
    # o_ref: (TILE_N, 1) VMEM.
    x = x_ref[...]
    w = w_ref[...]
    # VPU multiply + lane reduction, accumulate in f32.  Keeps the MXU idle and
    # avoids the 128x lane padding an (F, 1) weight column would cost.
    z = jnp.sum(x * w, axis=-1, keepdims=True)      # (TILE_N, 1) f32
    z = z + b_ref[0]                                # scalar bias from SMEM
    o_ref[...] = jax.nn.sigmoid(z).astype(o_ref.dtype)


def _round_up(x: int, m: int) -> int:
    return ((x + m - 1) // m) * m


def logistic_regression(x, w, b, *, tile_n: int = 512):
    """sigmoid(x @ w.T + b) with w in PyTorch nn.Linear layout.

    x: (N, F) f32, w: (1, F) f32, b: (1,) f32  ->  (N, 1) f32.
    """
    N, F = x.shape
    assert w.shape == (1, F) and b.shape == (1,)

    # Largest batch tile whose two x double-buffers stay well inside scoped
    # VMEM (conservative enough for v7x's 64 MiB physical VMEM).
    x_buffer_budget = 24 << 20                       # bytes for both x buffers
    max_tile = max(128, (x_buffer_budget // (8 * F)) // 128 * 128)
    tile_n = min(tile_n, max_tile, _round_up(N, 128))
    tile_n = _round_up(tile_n, 128)

    n_pad = _round_up(N, tile_n)
    grid_n = n_pad // tile_n
    if n_pad != N:
        x = jnp.pad(x, ((0, n_pad - N), (0, 0)))     # padded rows sliced off below

    # 2 x-buffers + resident weight + 2 out-buffers (lane-padded) + headroom.
    vmem_bytes = 2 * tile_n * F * 4 + 2 * F * 4 + 2 * tile_n * 128 * 4 + (2 << 20)
    vmem_limit = int(max(32 << 20, min(vmem_bytes, 56 << 20)))

    out = pl.pallas_call(
        _logreg_kernel,
        out_shape=jax.ShapeDtypeStruct((n_pad, 1), jnp.float32),
        grid_spec=pltpu.PrefetchScalarGridSpec(
            num_scalar_prefetch=0,
            grid=(grid_n,),
            in_specs=[
                pl.BlockSpec((tile_n, F), lambda i: (i, 0)),          # streamed x
                pl.BlockSpec((1, F), lambda i: (0, 0)),               # resident w
                pl.BlockSpec(memory_space=pltpu.MemorySpace.SMEM),    # scalar bias
            ],
            out_specs=pl.BlockSpec((tile_n, 1), lambda i: (i, 0)),
        ),
        compiler_params=pltpu.CompilerParams(
            dimension_semantics=("parallel",),
            vmem_limit_bytes=vmem_limit,
        ),
        cost_estimate=pl.CostEstimate(
            flops=2 * n_pad * F,
            transcendentals=n_pad,
            bytes_accessed=4 * (n_pad * F + F + n_pad + 1),
        ),
    )(x, w, b)

    return out[:N]


if __name__ == "__main__":
    key = jax.random.PRNGKey(0)
    k_x, k_w, k_b = jax.random.split(key, 3)

    N, F = 8, 32  # batch=8, n_input_features=32
    x = jax.random.normal(k_x, (N, F), dtype=jnp.float32)

    # nn.Linear(F, 1) parameter shapes: weight (1, F), bias (1,).
    bound = 1.0 / float(jnp.sqrt(jnp.float32(F)))
    w = jax.random.uniform(k_w, (1, F), dtype=jnp.float32, minval=-bound, maxval=bound)
    b = jax.random.uniform(k_b, (1,), dtype=jnp.float32, minval=-bound, maxval=bound)

    y = logistic_regression(x, w, b)
    jax.block_until_ready(y)

    # Reference check in plain JAX (matches torch.sigmoid(nn.Linear(F,1)(x))).
    y_ref = jax.nn.sigmoid(x @ w.T + b)
    assert y.shape == (N, 1)
    assert jnp.allclose(y, y_ref, atol=1e-5), (y, y_ref)

    print("KERNEL_OK")
</pallas_src>

<mosaic_0001>
module attributes {stable_mosaic.version = 11 : i64} {
  func.func @_logreg_kernel(%arg0: i32, %arg1: memref<128x32xf32, #tpu.memory_space<vmem>>, %arg2: memref<1x32xf32, #tpu.memory_space<vmem>>, %arg3: memref<1xf32, #tpu.memory_space<smem>>, %arg4: memref<128x1xf32, #tpu.memory_space<vmem>>) attributes {dimension_semantics = [#tpu.dimension_semantics<parallel>], iteration_bounds = array<i64: 1>, scalar_prefetch = 0 : i64, scratch_operands = 0 : i64, tpu.core_type = #tpu.core_type<tc>, window_params = [{transform_indices = @transform_0, window_bounds = array<i64: 128, 32>}, {pipeline_mode = #tpu.pipeline_mode<synchronous>, transform_indices = @transform_1, window_bounds = array<i64: 1, 32>}, {transform_indices = @transform_2, window_bounds = array<i64: 1>}, {transform_indices = @transform_3, window_bounds = array<i64: 128, 1>}]} {
    %c0 = arith.constant 0 : index
    %c0_0 = arith.constant 0 : index
    %0 = vector.load %arg1[%c0, %c0_0] : memref<128x32xf32, #tpu.memory_space<vmem>>, vector<128x32xf32>
    %c0_1 = arith.constant 0 : index
    %c0_2 = arith.constant 0 : index
    %1 = vector.load %arg2[%c0_1, %c0_2] : memref<1x32xf32, #tpu.memory_space<vmem>>, vector<1x32xf32>
    %2 = vector.broadcast %1 : vector<1x32xf32> to vector<128x32xf32>
    %3 = arith.mulf %0, %2 : vector<128x32xf32>
    %cst = arith.constant dense<0.000000e+00> : vector<128xf32>
    %4 = vector.multi_reduction <add>, %3, %cst [1] : vector<128x32xf32> to vector<128xf32>
    %5 = vector.shape_cast %4 : vector<128xf32> to vector<128x1xf32>
    %c0_3 = arith.constant 0 : index
    %6 = memref.load %arg3[%c0_3] : memref<1xf32, #tpu.memory_space<smem>>
    %7 = vector.broadcast %6 : f32 to vector<128x1xf32>
    %8 = arith.addf %5, %7 : vector<128x1xf32>
    %9 = arith.negf %8 : vector<128x1xf32>
    %10 = math.exp %9 : vector<128x1xf32>
    %cst_4 = arith.constant 1.000000e+00 : f32
    %11 = vector.broadcast %cst_4 : f32 to vector<128x1xf32>
    %12 = arith.addf %11, %10 : vector<128x1xf32>
    %13 = arith.divf %11, %12 : vector<128x1xf32>
    %c0_5 = arith.constant 0 : index
    %c0_6 = arith.constant 0 : index
    %14 = vector.load %arg4[%c0_5, %c0_6] : memref<128x1xf32, #tpu.memory_space<vmem>>, vector<128x1xf32>
    tpu.vector_store %arg4[%c0_5, %c0_6], %13 {strides = array<i32>} : memref<128x1xf32, #tpu.memory_space<vmem>>, vector<128x1xf32>,
    return
  }
  func.func @transform_0(%arg0: i32) -> (i32, i32) {
    %c0_i32 = arith.constant 0 : i32
    %c0_i32_0 = arith.constant 0 : i32
    return %arg0, %c0_i32 : i32, i32
  }
  func.func @transform_1(%arg0: i32) -> (i32, i32) {
    %c0_i32 = arith.constant 0 : i32
    %c0_i32_0 = arith.constant 0 : i32
    %c0_i32_1 = arith.constant 0 : i32
    return %c0_i32, %c0_i32_0 : i32, i32
  }
  func.func @transform_2(%arg0: i32) -> i32 {
    %c0_i32 = arith.constant 0 : i32
    %c0_i32_0 = arith.constant 0 : i32
    return %c0_i32 : i32
  }
  func.func @transform_3(%arg0: i32) -> (i32, i32) {
    %c0_i32 = arith.constant 0 : i32
    %c0_i32_0 = arith.constant 0 : i32
    return %arg0, %c0_i32 : i32, i32
  }
}

</mosaic_0001>

<bundles_post_ra>
// kernel: tpu_custom_call.1
= control target key start
LH: loop header
LB: loop body
LE: loop exit
PB: predicated region body
PF: predicated region fallthrough
CT: control target
= control target key end

     0   :  { %vm54_vm0 = vcmask 261120   ;;  %vm217_vm1 = vcmask 7168   ;;  %s491_s0 = inlined_call_operand.vmem [shape: f32[128,32], index: 0, kind: input, shape index: {}]   ;;  %s492_s1 = inlined_call_operand.vmem [shape: f32[1,32], index: 1, kind: input, shape index: {}]   ;;  %s493_s2 = inlined_call_operand.<no memory space> [shape: f32[1], index: 2, kind: input, shape index: {}]   ;;  %s494_s3 = inlined_call_operand.vmem [shape: f32[128,1], index: 3, kind: output, shape index: {}]  }
   0x1   :  { %v17_v0 = vld [vmem:[%s491_s0 + $0x10] sm:$0xff]  ;;  %v238_v1 = vld [vmem:[%s492_s1] ss:$0 sm:$0xff]  ;;  %v18_v5 = vld [vmem:[%s491_s0 + $0x18] sm:$0xff]  ;;  %v409_v49 = vstv %s493_s2 }
   0x2   :  { %v15_v2 = vld [vmem:[%s491_s0] sm:$0xff]  ;;  %v40_v3 = vmul.f32 %v238_v1, %v17_v0  ;;  %v16_v6 = vld [vmem:[%s491_s0 + $0x8] sm:$0xff]  ;;  %v41_v7 = vmul.f32 %v238_v1, %v18_v5  ;;  %v22_v17 = vld [vmem:[%s491_s0 + $0x38] sm:$0xff] }
   0x3   :  { %v38_v4 = vmul.f32 %v238_v1, %v15_v2  ;;  %v39_v8 = vmul.f32 %v238_v1, %v16_v6  ;;  %v20_v9 = vld [vmem:[%s491_s0 + $0x28] sm:$0xff]  ;;  %v19_v10 = vld [vmem:[%s491_s0 + $0x20] sm:$0xff]  ;;  %v21_v18 = vld [vmem:[%s491_s0 + $0x30] sm:$0xff]  ;;  %v45_v21 = vmul.f32 %v238_v1, %v22_v17 }
   0x4   :  { %v61_v11 = vsel %vm54_vm0, %v40_v3, 0.0  ;;  %v64_v13 = vsel %vm54_vm0, %v41_v7, 0.0  ;;  %v43_v15 = vmul.f32 %v238_v1, %v20_v9  ;;  %v42_v16 = vmul.f32 %v238_v1, %v19_v10  ;;  %v24_v23 = vld [vmem:[%s491_s0 + $0x48] sm:$0xff]  ;;  %v23_v24 = vld [vmem:[%s491_s0 + $0x40] sm:$0xff]  ;;  %v26_v29 = vld [vmem:[%s491_s0 + $0x58] sm:$0xff] }
   0x5   :  { %v55_v12 = vsel %vm54_vm0, %v38_v4, 0.0  ;;  %62 = vadd.xlane.f32.xlu1 %v61_v11  ;;  %v58_v14 = vsel %vm54_vm0, %v39_v8, 0.0  ;;  %v44_v22 = vmul.f32 %v238_v1, %v21_v18  ;;  %v76_v25 = vsel %vm54_vm0, %v45_v21, 0.0  ;;  %v25_v30 = vld [vmem:[%s491_s0 + $0x50] sm:$0xff]  ;;  %v28_v35 = vld [vmem:[%s491_s0 + $0x68] sm:$0xff]  ;;  %v27_v36 = vld [vmem:[%s491_s0 + $0x60] sm:$0xff] }
   0x6   :  { %56 = vadd.xlane.f32.xlu0 %v55_v12  ;;  %v70_v19 = vsel %vm54_vm0, %v43_v15, 0.0  ;;  %v67_v20 = vsel %vm54_vm0, %v42_v16, 0.0  ;;  %v47_v27 = vmul.f32 %v238_v1, %v24_v23  ;;  %v46_v28 = vmul.f32 %v238_v1, %v23_v24  ;;  %v30_v41 = vld [vmem:[%s491_s0 + $0x78] sm:$0xff]  ;;  %v29_v42 = vld [vmem:[%s491_s0 + $0x70] sm:$0xff] }
   0x7   :  { %v73_v26 = vsel %vm54_vm0, %v44_v22, 0.0  ;;  %v49_v33 = vmul.f32 %v238_v1, %v26_v29  ;;  %v48_v34 = vmul.f32 %v238_v1, %v25_v30  ;;  %v51_v39 = vmul.f32 %v238_v1, %v28_v35 }
   0x8   :  { %v82_v31 = vsel %vm54_vm0, %v47_v27, 0.0  ;;  %v79_v32 = vsel %vm54_vm0, %v46_v28, 0.0  ;;  %v50_v40 = vmul.f32 %v238_v1, %v27_v36  ;;  %v53_v45 = vmul.f32 %v238_v1, %v30_v41 }
   0x9   :  { %65 = vadd.xlane.f32.xlu1 %v64_v13  ;;  %v88_v37 = vsel %vm54_vm0, %v49_v33, 0.0  ;;  %v85_v38 = vsel %vm54_vm0, %v48_v34, 0.0  ;;  %v94_v43 = vsel %vm54_vm0, %v51_v39, 0.0  ;;  %v52_v46 = vmul.f32 %v238_v1, %v29_v42 }
   0xa   :  { %59 = vadd.xlane.f32.xlu0 %v58_v14  ;;  %v91_v44 = vsel %vm54_vm0, %v50_v40, 0.0  ;;  %v100_v47 = vsel %vm54_vm0, %v53_v45, 0.0 }
   0xb   :  { %v97_v48 = vsel %vm54_vm0, %v52_v46, 0.0 }
   0xd   :  { %71 = vadd.xlane.f32.xlu1 %v70_v19 }
   0xe   :  { %68 = vadd.xlane.f32.xlu0 %v67_v20 }
  0x11   :  { %77 = vadd.xlane.f32.xlu1 %v76_v25 }
  0x12   :  { %74 = vadd.xlane.f32.xlu0 %v73_v26 }
  0x15   :  { %83 = vadd.xlane.f32.xlu1 %v82_v31 }
  0x16   :  { %80 = vadd.xlane.f32.xlu0 %v79_v32 }
  0x19   :  { %89 = vadd.xlane.f32.xlu1 %v88_v37 }
  0x1a   :  { %86 = vadd.xlane.f32.xlu0 %v85_v38 }
  0x1d   :  { %95 = vadd.xlane.f32.xlu1 %v94_v43 }
  0x1e   :  { %92 = vadd.xlane.f32.xlu0 %v91_v44 }
  0x21   :  { %101 = vadd.xlane.f32.xlu1 %v100_v47 }
  0x22   :  { %98 = vadd.xlane.f32.xlu0 %v97_v48 }
  0x92   :  { %v63_v50 = vpop.xlane.xlu1 %62 }
  0x93   :  { %v57_v51 = vpop.xlane.xlu0 %56  ;;  %v107_v52 = vadd.f32 %v409_v49, %v63_v50 }
  0x94   :  { %v105_v53 = vadd.f32 %v409_v49, %v57_v51 }
  0x95   :  { %v241_v54 = vmul.f32 -1.442695, %v107_v52 }
  0x96   :  { %v239_v55 = vmul.f32 -1.442695, %v105_v53  ;;  %v66_v56 = vpop.xlane.xlu1 %65 }
  0x97   :  { %v60_v57 = vpop.xlane.xlu0 %59  ;;  %255 = vpow2.f32 %v241_v54  ;;  %v108_v58 = vadd.f32 %v409_v49, %v66_v56 }
  0x98   :  { %v106_v59 = vadd.f32 %v409_v49, %v60_v57  ;;  %257 = vpow2.f32 %v239_v55 }
  0x99   :  { %v242_v60 = vmul.f32 -1.442695, %v108_v58 }
  0x9a   :  { %v240_v61 = vmul.f32 -1.442695, %v106_v59  ;;  %v72_v62 = vpop.xlane.xlu1 %71 }
  0x9b   :  { %v69_v63 = vpop.xlane.xlu0 %68  ;;  %259 = vpow2.f32 %v242_v60  ;;  %v110_v0 = vadd.f32 %v409_v49, %v72_v62 }
  0x9c   :  { %v109_v1 = vadd.f32 %v409_v49, %v69_v63  ;;  %261 = vpow2.f32 %v240_v61 }
  0x9d   :  { %v244_v2 = vmul.f32 -1.442695, %v110_v0 }
  0x9e   :  { %v243_v3 = vmul.f32 -1.442695, %v109_v1  ;;  %v78_v4 = vpop.xlane.xlu1 %77 }
  0x9f   :  { %v75_v5 = vpop.xlane.xlu0 %74  ;;  %263 = vpow2.f32 %v244_v2  ;;  %v112_v6 = vadd.f32 %v409_v49, %v78_v4 }
  0xa0   :  { %v111_v7 = vadd.f32 %v409_v49, %v75_v5  ;;  %265 = vpow2.f32 %v243_v3 }
  0xa1   :  { %v256_v8 = vpop.eup %255  ;;  %v246_v9 = vmul.f32 -1.442695, %v112_v6 }
  0xa2   :  { %v258_v10 = vpop.eup %257  ;;  %v171_v11 = vadd.f32 1.0, %v256_v8  ;;  %v245_v12 = vmul.f32 -1.442695, %v111_v7  ;;  %v84_v13 = vpop.xlane.xlu1 %83 }
  0xa3   :  { %v81_v14 = vpop.xlane.xlu0 %80  ;;  %v169_v15 = vadd.f32 1.0, %v258_v10  ;;  %267 = vpow2.f32 %v246_v9  ;;  %v114_v16 = vadd.f32 %v409_v49, %v84_v13 }
  0xa4   :  { %v113_v17 = vadd.f32 %v409_v49, %v81_v14  ;;  %269 = vrcp.f32 %v171_v11 }
  0xa5   :  { %v260_v18 = vpop.eup %259  ;;  %271 = vrcp.f32 %v169_v15  ;;  %v248_v19 = vmul.f32 -1.442695, %v114_v16 }
  0xa6   :  { %v262_v20 = vpop.eup %261  ;;  %v172_v21 = vadd.f32 1.0, %v260_v18  ;;  %273 = vpow2.f32 %v245_v12  ;;  %v247_v22 = vmul.f32 -1.442695, %v113_v17  ;;  %v90_v23 = vpop.xlane.xlu1 %89 }
  0xa7   :  { %v87_v24 = vpop.xlane.xlu0 %86  ;;  %v170_v25 = vadd.f32 1.0, %v262_v20  ;;  %275 = vpow2.f32 %v248_v19  ;;  %v116_v26 = vadd.f32 %v409_v49, %v90_v23 }
  0xa8   :  { %v115_v27 = vadd.f32 %v409_v49, %v87_v24  ;;  %277 = vrcp.f32 %v172_v21 }
  0xa9   :  { %v264_v28 = vpop.eup %263  ;;  %279 = vrcp.f32 %v170_v25  ;;  %v250_v29 = vmul.f32 -1.442695, %v116_v26 }
  0xaa   :  { %v266_v30 = vpop.eup %265  ;;  %v174_v31 = vadd.f32 1.0, %v264_v28  ;;  %281 = vpow2.f32 %v247_v22  ;;  %v249_v32 = vmul.f32 -1.442695, %v115_v27  ;;  %v96_v33 = vpop.xlane.xlu1 %95 }
  0xab   :  { %v93_v34 = vpop.xlane.xlu0 %92  ;;  %v173_v35 = vadd.f32 1.0, %v266_v30  ;;  %283 = vpow2.f32 %v250_v29  ;;  %v118_v36 = vadd.f32 %v409_v49, %v96_v33 }
  0xac   :  { %v117_v37 = vadd.f32 %v409_v49, %v93_v34  ;;  %285 = vrcp.f32 %v174_v31 }
  0xad   :  { %v268_v38 = vpop.eup %267  ;;  %287 = vrcp.f32 %v173_v35  ;;  %v252_v39 = vmul.f32 -1.442695, %v118_v36 }
  0xae   :  { %v251_v40 = vmul.f32 -1.442695, %v117_v37  ;;  %v270_v41 = vpop.eup %269  ;;  %v176_v42 = vadd.f32 1.0, %v268_v38  ;;  %289 = vpow2.f32 %v249_v32  ;;  %v102_v43 = vpop.xlane.xlu1 %101 }
  0xaf   :  { %v99_v44 = vpop.xlane.xlu0 %98  ;;  %v272_v45 = vpop.eup %271  ;;  %220 = vst.msk [vmem:[%s494_s3 + $0x10] sm:$0xff] %vm217_vm1, %v270_v41  ;;  %291 = vpow2.f32 %v252_v39  ;;  %v120_v46 = vadd.f32 %v409_v49, %v102_v43 }
  0xb0   :  { %v119_v47 = vadd.f32 %v409_v49, %v99_v44  ;;  %v274_v48 = vpop.eup %273  ;;  %218 = vst.msk [vmem:[%s494_s3] sm:$0xff] %vm217_vm1, %v272_v45  ;;  %293 = vrcp.f32 %v176_v42 }
  0xb1   :  { %v276_v50 = vpop.eup %275  ;;  %v175_v51 = vadd.f32 1.0, %v274_v48  ;;  %295 = vpow2.f32 %v251_v40  ;;  %v254_v52 = vmul.f32 -1.442695, %v120_v46 }
  0xb2   :  { %v278_v53 = vpop.eup %277  ;;  %v178_v54 = vadd.f32 1.0, %v276_v50  ;;  %v253_v55 = vmul.f32 -1.442695, %v119_v47 }
  0xb3   :  { %v280_v56 = vpop.eup %279  ;;  %221 = vst.msk [vmem:[%s494_s3 + $0x18] sm:$0xff] %vm217_vm1, %v278_v53  ;;  %297 = vrcp.f32 %v175_v51 }
  0xb4   :  { %v282_v49 = vpop.eup %281  ;;  %219 = vst.msk [vmem:[%s494_s3 + $0x8] sm:$0xff] %vm217_vm1, %v280_v56  ;;  %299 = vrcp.f32 %v178_v54 }
  0xb5   :  { %v284_v57 = vpop.eup %283  ;;  %v177_v58 = vadd.f32 1.0, %v282_v49  ;;  %301 = vpow2.f32 %v254_v52 }
  0xb6   :  { %v286_v59 = vpop.eup %285  ;;  %v180_v60 = vadd.f32 1.0, %v284_v57  ;;  %303 = vpow2.f32 %v253_v55 }
  0xb7   :  { %v288_v61 = vpop.eup %287  ;;  %223 = vst.msk [vmem:[%s494_s3 + $0x28] sm:$0xff] %vm217_vm1, %v286_v59  ;;  %305 = vrcp.f32 %v177_v58 }
  0xb8   :  { %v290_v62 = vpop.eup %289  ;;  %222 = vst.msk [vmem:[%s494_s3 + $0x20] sm:$0xff] %vm217_vm1, %v288_v61  ;;  %307 = vrcp.f32 %v180_v60 }
  0xb9   :  { %v292_v63 = vpop.eup %291  ;;  %v179_v0 = vadd.f32 1.0, %v290_v62 }
  0xba   :  { %v294_v1 = vpop.eup %293  ;;  %v182_v2 = vadd.f32 1.0, %v292_v63 }
  0xbb   :  { %v296_v3 = vpop.eup %295  ;;  %225 = vst.msk [vmem:[%s494_s3 + $0x38] sm:$0xff] %vm217_vm1, %v294_v1  ;;  %309 = vrcp.f32 %v179_v0 }
  0xbc   :  { %311 = vrcp.f32 %v182_v2  ;;  %v181_v4 = vadd.f32 1.0, %v296_v3 }
  0xbd   :  { %v298_v5 = vpop.eup %297 }
  0xbe   :  { %v300_v6 = vpop.eup %299  ;;  %224 = vst.msk [vmem:[%s494_s3 + $0x30] sm:$0xff] %vm217_vm1, %v298_v5  ;;  %313 = vrcp.f32 %v181_v4 }
  0xbf   :  { %v302_v7 = vpop.eup %301  ;;  %227 = vst.msk [vmem:[%s494_s3 + $0x48] sm:$0xff] %vm217_vm1, %v300_v6 }
  0xc0   :  { %v304_v8 = vpop.eup %303  ;;  %v184_v9 = vadd.f32 1.0, %v302_v7 }
  0xc1   :  { %v306_v10 = vpop.eup %305  ;;  %v183_v11 = vadd.f32 1.0, %v304_v8 }
  0xc2   :  { %v308_v12 = vpop.eup %307  ;;  %226 = vst.msk [vmem:[%s494_s3 + $0x40] sm:$0xff] %vm217_vm1, %v306_v10  ;;  %315 = vrcp.f32 %v184_v9 }
  0xc3   :  { %229 = vst.msk [vmem:[%s494_s3 + $0x58] sm:$0xff] %vm217_vm1, %v308_v12  ;;  %317 = vrcp.f32 %v183_v11 }
  0xc5   :  { %v310_v13 = vpop.eup %309 }
  0xc6   :  { %v312_v14 = vpop.eup %311  ;;  %228 = vst.msk [vmem:[%s494_s3 + $0x50] sm:$0xff] %vm217_vm1, %v310_v13 }
  0xc7   :  { %231 = vst.msk [vmem:[%s494_s3 + $0x68] sm:$0xff] %vm217_vm1, %v312_v14 }
  0xc8   :  { %v314_v15 = vpop.eup %313 }
  0xc9   :  { %230 = vst.msk [vmem:[%s494_s3 + $0x60] sm:$0xff] %vm217_vm1, %v314_v15 }
  0xcc   :  { %v316_v16 = vpop.eup %315 }
  0xcd   :  { %v318_v17 = vpop.eup %317  ;;  %233 = vst.msk [vmem:[%s494_s3 + $0x78] sm:$0xff] %vm217_vm1, %v316_v16 }
  0xce   :  { %232 = vst.msk [vmem:[%s494_s3 + $0x70] sm:$0xff] %vm217_vm1, %v318_v17 }

</bundles_post_ra>
